<compile_context>
chip_gen: v6e
topology: v6e:2x2x1
jax: 0.10.0
libtpu: 0.0.40
codegen_flags: <defaults>
</compile_context>

<pallas_src>
import functools
import math

import jax
import jax.numpy as jnp
from jax import lax
from jax.experimental import pallas as pl
from jax.experimental.pallas import tpu as pltpu

_LN_EPS = 1e-5


# ----------------------------------------------------------------------------
# In-kernel helpers
# ----------------------------------------------------------------------------
def _layernorm_f32(x, gamma, beta, eps=_LN_EPS):
    """Row-wise LayerNorm in f32 (matches nn.LayerNorm: biased var, eps=1e-5)."""
    x = x.astype(jnp.float32)
    mean = jnp.mean(x, axis=-1, keepdims=True)
    var = jnp.mean(jnp.square(x - mean), axis=-1, keepdims=True)
    inv = lax.rsqrt(var + eps)
    return (x - mean) * inv * gamma.astype(jnp.float32) + beta.astype(jnp.float32)


def _gelu_exact(x):
    """Exact (erf-based) GELU, identical to nn.GELU() default."""
    return 0.5 * x * (1.0 + lax.erf(x * (1.0 / math.sqrt(2.0))))


# ----------------------------------------------------------------------------
# Kernel 1: norm1 + QKV projection, tiled over tokens
# ----------------------------------------------------------------------------
def _ln_qkv_kernel(x_ref, g_ref, b_ref, wqkv_ref, bqkv_ref, o_ref):
    xn = _layernorm_f32(x_ref[...], g_ref[...], b_ref[...])
    out = jnp.dot(xn.astype(wqkv_ref.dtype), wqkv_ref[...],
                  preferred_element_type=jnp.float32)
    o_ref[...] = (out + bqkv_ref[...].astype(jnp.float32)).astype(o_ref.dtype)


# ----------------------------------------------------------------------------
# Kernel 2: per-batch-row attention over all heads (whole sequence in VMEM).
# Head split/merge happens on the VMEM tile; output store is lane-dense (S, E).
# ----------------------------------------------------------------------------
def _attn_kernel(qkv_ref, o_ref, *, num_heads, head_dim, emb_dim, scale):
    outs = []
    for h in range(num_heads):                       # static unroll over heads
        c = h * head_dim
        q = qkv_ref[0, :, c:c + head_dim]                            # (S, D)
        k = qkv_ref[0, :, emb_dim + c:emb_dim + c + head_dim]        # (S, D)
        v = qkv_ref[0, :, 2 * emb_dim + c:2 * emb_dim + c + head_dim]
        s = jnp.einsum('qd,kd->qk', q, k,
                       preferred_element_type=jnp.float32) * scale
        s = s - jnp.max(s, axis=-1, keepdims=True)
        p = jnp.exp(s)
        # attn_drop: identity in inference mode.
        p = p * pl.reciprocal(jnp.sum(p, axis=-1, keepdims=True), approx=True)
        outs.append(jnp.einsum('qk,kd->qd', p.astype(v.dtype), v,
                               preferred_element_type=jnp.float32))
    # Merge heads along lanes and store once (lane-dense, unmasked for E % 128 == 0).
    o_ref[0] = jnp.concatenate(outs, axis=-1).astype(o_ref.dtype)


# ----------------------------------------------------------------------------
# Kernel 3: attn-out projection + residual + norm2 + MLP + residual, tiled over tokens
# ----------------------------------------------------------------------------
def _proj_mlp_kernel(x_ref, a_ref, wp_ref, bp_ref, g2_ref, bt2_ref,
                     w1_ref, b1_ref, w2_ref, b2_ref, o_ref):
    x = x_ref[...].astype(jnp.float32)

    # proj(attn_out) + proj_drop(identity) + first residual
    proj = jnp.dot(a_ref[...].astype(wp_ref.dtype), wp_ref[...],
                   preferred_element_type=jnp.float32)
    x1 = x + proj + bp_ref[...].astype(jnp.float32)

    # norm2 + MLP (Linear -> GELU -> Dropout(id) -> Linear -> Dropout(id))
    h = _layernorm_f32(x1, g2_ref[...], bt2_ref[...])
    h = jnp.dot(h.astype(w1_ref.dtype), w1_ref[...],
                preferred_element_type=jnp.float32)
    h = _gelu_exact(h + b1_ref[...].astype(jnp.float32))
    out = jnp.dot(h.astype(w2_ref.dtype), w2_ref[...],
                  preferred_element_type=jnp.float32)
    out = out + b2_ref[...].astype(jnp.float32)

    # second residual
    o_ref[...] = (x1 + out).astype(o_ref.dtype)


# ----------------------------------------------------------------------------
# pallas_call wrappers
# ----------------------------------------------------------------------------
def _row_tile(n, target):
    # Full array if small (equal-full satisfies the (8,128) rule), else a
    # sublane-aligned tile.  Default target 512 rows: measured tiled kernels only
    # reach ~85% of HBM roofline at >=512-row tiles (sweep {256,512,1024}; cap
    # lower on v7x's 64 MiB VMEM).
    if n <= target:
        return n
    return max(8, (target // 8) * 8)


def _resident(shape):
    # Whole-array block with a constant index_map: stays VMEM-resident across all
    # grid steps (the pipeline skips the re-fetch when the block index is unchanged).
    # TODO(synk): single-buffer these (pipeline_mode=pl.Buffered(1)) once buffer-count
    # plumbing is verified on the target jax build; until then, pass bf16 params for
    # ViT-B-sized layers so the double-buffered weights fit v5e's / v7x's VMEM budget.
    return pl.BlockSpec(shape, lambda i: (0,) * len(shape))


def _vmem_limit(est_bytes):
    # Explicit scoped-VMEM budget with headroom: never below the 32 MiB v6e/v7x
    # default, capped at v7x's 64 MiB physical VMEM.
    return int(min(max(2 * est_bytes + (4 << 20), 32 << 20), 64 << 20))


def ln_qkv(x2d, gamma, beta, wqkv, bqkv, *, out_dtype, token_tile=512):
    n, e = x2d.shape
    e3 = wqkv.shape[1]
    tm = _row_tile(n, token_tile)
    in_b = jnp.dtype(x2d.dtype).itemsize
    w_b = jnp.dtype(wqkv.dtype).itemsize
    out_b = jnp.dtype(out_dtype).itemsize
    cost = pl.CostEstimate(
        flops=2 * n * e * e3 + 10 * n * e,
        transcendentals=n,
        bytes_accessed=n * e * in_b + e * e3 * w_b + n * e3 * out_b,
    )
    vmem = _vmem_limit(2 * tm * (e * in_b + e3 * out_b)
                       + 2 * (e * e3 + e3 + 2 * e) * w_b)
    # Tail tiles (N % TM != 0) run LN/matmul on padding rows and are masked out on
    # writeback -- benign (rsqrt(var + eps) cannot NaN).
    return pl.pallas_call(
        _ln_qkv_kernel,
        grid=(pl.cdiv(n, tm),),
        in_specs=[
            pl.BlockSpec((tm, e), lambda i: (i, 0)),
            _resident((1, e)),
            _resident((1, e)),
            _resident((e, e3)),
            _resident((1, e3)),
        ],
        out_specs=pl.BlockSpec((tm, e3), lambda i: (i, 0)),
        out_shape=jax.ShapeDtypeStruct((n, e3), out_dtype),
        compiler_params=pltpu.CompilerParams(
            dimension_semantics=("parallel",), vmem_limit_bytes=vmem),
        cost_estimate=cost,
    )(x2d, gamma, beta, wqkv, bqkv)


def mhsa(qkv3d, *, num_heads, scale, out_dtype):
    b, s, e3 = qkv3d.shape
    e = e3 // 3
    d = e // num_heads
    in_b = jnp.dtype(qkv3d.dtype).itemsize
    out_b = jnp.dtype(out_dtype).itemsize
    cost = pl.CostEstimate(
        flops=4 * b * num_heads * s * s * d + 6 * b * num_heads * s * s,
        transcendentals=b * num_heads * s * (s + 1),
        bytes_accessed=b * s * (e3 * in_b + e * out_b),
    )
    vmem = _vmem_limit(2 * s * (e3 * in_b + e * out_b) + 8 * s * s)
    kern = functools.partial(_attn_kernel, num_heads=num_heads,
                             head_dim=d, emb_dim=e, scale=scale)
    # NOTE: block last-two dims equal the full (S, 3E)/(S, E) extents, so arbitrary
    # S (e.g. ViT's 197) is legal; padding S to a multiple of 8/128 in the wrapper
    # would only tighten vreg masking, not change correctness.
    return pl.pallas_call(
        kern,
        grid=(b,),
        in_specs=[pl.BlockSpec((1, s, e3), lambda i: (i, 0, 0))],
        out_specs=pl.BlockSpec((1, s, e), lambda i: (i, 0, 0)),
        out_shape=jax.ShapeDtypeStruct((b, s, e), out_dtype),
        compiler_params=pltpu.CompilerParams(
            dimension_semantics=("parallel",), vmem_limit_bytes=vmem),
        cost_estimate=cost,
    )(qkv3d)


def proj_mlp_residual(x2d, attn2d, wp, bp, g2, beta2, w1, b1, w2, b2,
                      *, token_tile=512):
    n, e = x2d.shape
    hidden = w1.shape[1]
    tm = _row_tile(n, token_tile)
    x_b = jnp.dtype(x2d.dtype).itemsize
    a_b = jnp.dtype(attn2d.dtype).itemsize
    w_b = jnp.dtype(wp.dtype).itemsize
    cost = pl.CostEstimate(
        flops=2 * n * (e * e + 2 * e * hidden) + 20 * n * e + 10 * n * hidden,
        transcendentals=n * hidden + n,
        bytes_accessed=n * e * (2 * x_b + a_b)
        + (e * e + 2 * e * hidden + 5 * e + hidden) * w_b,
    )
    vmem = _vmem_limit(2 * tm * (2 * e * x_b + e * a_b + 4 * hidden)
                       + 2 * (e * e + 2 * e * hidden + 5 * e + hidden) * w_b)
    return pl.pallas_call(
        _proj_mlp_kernel,
        grid=(pl.cdiv(n, tm),),
        in_specs=[
            pl.BlockSpec((tm, e), lambda i: (i, 0)),   # x (residual stream)
            pl.BlockSpec((tm, e), lambda i: (i, 0)),   # merged attention output
            _resident((e, e)),                         # W_proj
            _resident((1, e)),                         # b_proj
            _resident((1, e)),                         # norm2 gamma
            _resident((1, e)),                         # norm2 beta
            _resident((e, hidden)),                    # W_fc1
            _resident((1, hidden)),                    # b_fc1
            _resident((hidden, e)),                    # W_fc2
            _resident((1, e)),                         # b_fc2
        ],
        out_specs=pl.BlockSpec((tm, e), lambda i: (i, 0)),
        out_shape=jax.ShapeDtypeStruct((n, e), x2d.dtype),
        compiler_params=pltpu.CompilerParams(
            dimension_semantics=("parallel",), vmem_limit_bytes=vmem),
        cost_estimate=cost,
    )(x2d, attn2d, wp, bp, g2, beta2, w1, b1, w2, b2)


def block_forward(x, params, num_heads, *, token_tile=512,
                  interm_dtype=jnp.bfloat16):
    """x: (B, S, E) -> (B, S, E). Matches Block.forward in eval mode."""
    b, s, e = x.shape
    d = e // num_heads
    n = b * s
    x2d = x.reshape(n, e)

    # K1: norm1 + qkv (row-tiled, weight-resident).  bf16 inter-kernel activation.
    qkv = ln_qkv(x2d, params['g1'], params['beta1'], params['wqkv'],
                 params['bqkv'], out_dtype=interm_dtype, token_tile=token_tile)

    # K2 reads the qkv buffer as (B, S, 3E) -- a metadata-only reshape, no HBM
    # transpose.  Head split/merge happens inside the kernel on the VMEM tile and
    # the merged (B, S, E) attention output comes back lane-dense.
    attn = mhsa(qkv.reshape(b, s, 3 * e), num_heads=num_heads,
                scale=1.0 / math.sqrt(d), out_dtype=interm_dtype)

    # K3: proj + residual + norm2 + MLP + residual (fused, row-tiled).
    y2d = proj_mlp_residual(x2d, attn.reshape(n, e), params['wp'], params['bp'],
                            params['g2'], params['beta2'],
                            params['w1'], params['b1'],
                            params['w2'], params['b2'],
                            token_tile=token_tile)
    return y2d.reshape(b, s, e)


# ----------------------------------------------------------------------------
# Parameter init (PyTorch-style) and pure-JAX reference
# ----------------------------------------------------------------------------
def init_params(key, emb_dim, num_heads, mlp_ratio, dtype=jnp.float32):
    """nn.Linear-style uniform(+-1/sqrt(fan_in)); weights already transposed to
    (in_features, out_features). LayerNorms init to gamma=1, beta=0.
    Pass dtype=jnp.bfloat16 for the bf16-MXU / halved-VMEM production path."""
    del num_heads
    hidden = mlp_ratio * emb_dim
    ks = jax.random.split(key, 8)

    def linear(kw, kb, fan_in, fan_out):
        bound = 1.0 / math.sqrt(fan_in)
        w = jax.random.uniform(kw, (fan_in, fan_out), dtype, -bound, bound)
        bvec = jax.random.uniform(kb, (1, fan_out), dtype, -bound, bound)
        return w, bvec

    wqkv, bqkv = linear(ks[0], ks[1], emb_dim, 3 * emb_dim)
    wp, bp = linear(ks[2], ks[3], emb_dim, emb_dim)
    w1, b1 = linear(ks[4], ks[5], emb_dim, hidden)
    w2, b2 = linear(ks[6], ks[7], hidden, emb_dim)
    return dict(
        g1=jnp.ones((1, emb_dim), dtype), beta1=jnp.zeros((1, emb_dim), dtype),
        g2=jnp.ones((1, emb_dim), dtype), beta2=jnp.zeros((1, emb_dim), dtype),
        wqkv=wqkv, bqkv=bqkv, wp=wp, bp=bp, w1=w1, b1=b1, w2=w2, b2=b2,
    )


def block_reference(x, p, num_heads):
    b, s, e = x.shape
    h = num_heads
    d = e // h

    def ln(z, g, bt):
        m = z.mean(-1, keepdims=True)
        v = jnp.square(z - m).mean(-1, keepdims=True)
        return (z - m) / jnp.sqrt(v + _LN_EPS) * g + bt

    xn = ln(x, p['g1'], p['beta1'])
    qkv = jnp.einsum('bse,ef->bsf', xn, p['wqkv']) + p['bqkv']
    qkv = qkv.reshape(b, s, 3, h, d).transpose(2, 0, 3, 1, 4)
    q, k_, v_ = qkv[0], qkv[1], qkv[2]
    sc = jnp.einsum('bhqd,bhkd->bhqk', q, k_) / math.sqrt(d)
    attn = jax.nn.softmax(sc, axis=-1)
    wa = jnp.einsum('bhqk,bhkd->bhqd', attn, v_)
    wa = wa.transpose(0, 2, 1, 3).reshape(b, s, e)
    x1 = x + jnp.einsum('bse,ef->bsf', wa, p['wp']) + p['bp']
    hm = ln(x1, p['g2'], p['beta2'])
    hm = jnp.einsum('bse,ef->bsf', hm, p['w1']) + p['b1']
    hm = 0.5 * hm * (1.0 + lax.erf(hm / math.sqrt(2.0)))
    return x1 + jnp.einsum('bsf,fe->bse', hm, p['w2']) + p['b2']


if __name__ == "__main__":
    # Small shapes consistent with the module: (batch, seq, emb_dim), heads | emb_dim.
    # (Validate with ViT-realistic shapes E=768, S=197, D=64 before trusting perf.)
    batch, seq = 2, 8
    emb_dim, num_heads, mlp_ratio = 32, 4, 4      # head_dim = 8, hidden = 128

    key = jax.random.PRNGKey(0)
    kx, kp = jax.random.split(key)
    x = jax.random.normal(kx, (batch, seq, emb_dim), jnp.float32)
    params = init_params(kp, emb_dim, num_heads, mlp_ratio, dtype=jnp.float32)

    y = block_forward(x, params, num_heads)
    jax.block_until_ready(y)

    y_ref = block_reference(x, params, num_heads)
    assert y.shape == (batch, seq, emb_dim)
    max_err = float(jnp.max(jnp.abs(y.astype(jnp.float32) - y_ref)))
    # Tolerance accounts for bf16 inter-kernel activations, default (bf16-MXU)
    # matmul precision on both sides, and the approximate softmax reciprocal.
    assert jnp.allclose(y.astype(jnp.float32), y_ref, atol=2e-2, rtol=2e-2), max_err

    print("KERNEL_OK")
</pallas_src>

<mosaic_0001>
module attributes {stable_mosaic.version = 11 : i64} {
  func.func @_ln_qkv_kernel(%arg0: i32, %arg1: memref<16x32xf32, #tpu.memory_space<vmem>>, %arg2: memref<1x32xf32, #tpu.memory_space<vmem>>, %arg3: memref<1x32xf32, #tpu.memory_space<vmem>>, %arg4: memref<32x96xf32, #tpu.memory_space<vmem>>, %arg5: memref<1x96xf32, #tpu.memory_space<vmem>>, %arg6: memref<16x96xbf16, #tpu.memory_space<vmem>>) attributes {dimension_semantics = [#tpu.dimension_semantics<parallel>], iteration_bounds = array<i64: 1>, scalar_prefetch = 0 : i64, scratch_operands = 0 : i64, tpu.core_type = #tpu.core_type<tc>, window_params = [{transform_indices = @transform_0, window_bounds = array<i64: 16, 32>}, {pipeline_mode = #tpu.pipeline_mode<synchronous>, transform_indices = @transform_1, window_bounds = array<i64: 1, 32>}, {pipeline_mode = #tpu.pipeline_mode<synchronous>, transform_indices = @transform_2, window_bounds = array<i64: 1, 32>}, {pipeline_mode = #tpu.pipeline_mode<synchronous>, transform_indices = @transform_3, window_bounds = array<i64: 32, 96>}, {pipeline_mode = #tpu.pipeline_mode<synchronous>, transform_indices = @transform_4, window_bounds = array<i64: 1, 96>}, {transform_indices = @transform_5, window_bounds = array<i64: 16, 96>}]} {
    %c0 = arith.constant 0 : index
    %c0_0 = arith.constant 0 : index
    %0 = vector.load %arg1[%c0, %c0_0] : memref<16x32xf32, #tpu.memory_space<vmem>>, vector<16x32xf32>
    %c0_1 = arith.constant 0 : index
    %c0_2 = arith.constant 0 : index
    %1 = vector.load %arg2[%c0_1, %c0_2] : memref<1x32xf32, #tpu.memory_space<vmem>>, vector<1x32xf32>
    %c0_3 = arith.constant 0 : index
    %c0_4 = arith.constant 0 : index
    %2 = vector.load %arg3[%c0_3, %c0_4] : memref<1x32xf32, #tpu.memory_space<vmem>>, vector<1x32xf32>
    %cst = arith.constant dense<0.000000e+00> : vector<16xf32>
    %3 = vector.multi_reduction <add>, %0, %cst [1] : vector<16x32xf32> to vector<16xf32>
    %4 = vector.shape_cast %3 : vector<16xf32> to vector<16x1xf32>
    %cst_5 = arith.constant 3.200000e+01 : f32
    %5 = vector.broadcast %cst_5 : f32 to vector<16x1xf32>
    %6 = arith.divf %4, %5 : vector<16x1xf32>
    %7 = vector.broadcast %6 : vector<16x1xf32> to vector<16x32xf32>
    %8 = arith.subf %0, %7 : vector<16x32xf32>
    %9 = arith.mulf %8, %8 : vector<16x32xf32>
    %cst_6 = arith.constant dense<0.000000e+00> : vector<16xf32>
    %10 = vector.multi_reduction <add>, %9, %cst_6 [1] : vector<16x32xf32> to vector<16xf32>
    %11 = vector.shape_cast %10 : vector<16xf32> to vector<16x1xf32>
    %cst_7 = arith.constant 3.200000e+01 : f32
    %12 = vector.broadcast %cst_7 : f32 to vector<16x1xf32>
    %13 = arith.divf %11, %12 : vector<16x1xf32>
    %cst_8 = arith.constant 9.99999974E-6 : f32
    %14 = vector.broadcast %cst_8 : f32 to vector<16x1xf32>
    %15 = arith.addf %13, %14 : vector<16x1xf32>
    %16 = math.rsqrt %15 : vector<16x1xf32>
    %17 = vector.broadcast %6 : vector<16x1xf32> to vector<16x32xf32>
    %18 = arith.subf %0, %17 : vector<16x32xf32>
    %19 = vector.broadcast %16 : vector<16x1xf32> to vector<16x32xf32>
    %20 = arith.mulf %18, %19 : vector<16x32xf32>
    %21 = vector.broadcast %1 : vector<1x32xf32> to vector<16x32xf32>
    %22 = arith.mulf %20, %21 : vector<16x32xf32>
    %23 = vector.broadcast %2 : vector<1x32xf32> to vector<16x32xf32>
    %24 = arith.addf %22, %23 : vector<16x32xf32>
    %c0_9 = arith.constant 0 : index
    %c0_10 = arith.constant 0 : index
    %25 = vector.load %arg4[%c0_9, %c0_10] : memref<32x96xf32, #tpu.memory_space<vmem>>, vector<32x96xf32>
    %cst_11 = arith.constant dense<0.000000e+00> : vector<16x96xf32>
    %26 = tpu.matmul %24, %25, %cst_11 {dimension_numbers = #tpu.dot_dimension_numbers<[1], [0], [0], [1], [0, 0, 1, 1], [], []>} : vector<16x32xf32>, vector<32x96xf32>, vector<16x96xf32> -> vector<16x96xf32>
    %c0_12 = arith.constant 0 : index
    %c0_13 = arith.constant 0 : index
    %27 = vector.load %arg5[%c0_12, %c0_13] : memref<1x96xf32, #tpu.memory_space<vmem>>, vector<1x96xf32>
    %28 = vector.broadcast %27 : vector<1x96xf32> to vector<16x96xf32>
    %29 = arith.addf %26, %28 : vector<16x96xf32>
    %30 = arith.truncf %29 : vector<16x96xf32> to vector<16x96xbf16>
    %c0_14 = arith.constant 0 : index
    %c0_15 = arith.constant 0 : index
    %31 = vector.load %arg6[%c0_14, %c0_15] : memref<16x96xbf16, #tpu.memory_space<vmem>>, vector<16x96xbf16>
    tpu.vector_store %arg6[%c0_14, %c0_15], %30 {strides = array<i32>} : memref<16x96xbf16, #tpu.memory_space<vmem>>, vector<16x96xbf16>,
    return
  }
  func.func @transform_0(%arg0: i32) -> (i32, i32) {
    %c0_i32 = arith.constant 0 : i32
    %c0_i32_0 = arith.constant 0 : i32
    return %arg0, %c0_i32 : i32, i32
  }
  func.func @transform_1(%arg0: i32) -> (i32, i32) {
    %c0_i32 = arith.constant 0 : i32
    %c0_i32_0 = arith.constant 0 : i32
    %c0_i32_1 = arith.constant 0 : i32
    return %c0_i32, %c0_i32_0 : i32, i32
  }
  func.func @transform_2(%arg0: i32) -> (i32, i32) {
    %c0_i32 = arith.constant 0 : i32
    %c0_i32_0 = arith.constant 0 : i32
    %c0_i32_1 = arith.constant 0 : i32
    return %c0_i32, %c0_i32_0 : i32, i32
  }
  func.func @transform_3(%arg0: i32) -> (i32, i32) {
    %c0_i32 = arith.constant 0 : i32
    %c0_i32_0 = arith.constant 0 : i32
    %c0_i32_1 = arith.constant 0 : i32
    return %c0_i32, %c0_i32_0 : i32, i32
  }
  func.func @transform_4(%arg0: i32) -> (i32, i32) {
    %c0_i32 = arith.constant 0 : i32
    %c0_i32_0 = arith.constant 0 : i32
    %c0_i32_1 = arith.constant 0 : i32
    return %c0_i32, %c0_i32_0 : i32, i32
  }
  func.func @transform_5(%arg0: i32) -> (i32, i32) {
    %c0_i32 = arith.constant 0 : i32
    %c0_i32_0 = arith.constant 0 : i32
    return %arg0, %c0_i32 : i32, i32
  }
}

</mosaic_0001>

<bundles_post_ra>
// kernel: tpu_custom_call.1
= control target key start
LH: loop header
LB: loop body
LE: loop exit
PB: predicated region body
PF: predicated region fallthrough
CT: control target
= control target key end

     0   :  { %10 = vsyncpa [#allocation3], 0  ;;  %s382_s0 = inlined_call_operand.hbm [shape: f32[16,32], index: 0, kind: input, shape index: {}]   ;;  %s383_s1 = inlined_call_operand.vmem [shape: f32[1,32], index: 1, kind: input, shape index: {}]   ;;  %s384_s2 = inlined_call_operand.vmem [shape: f32[1,32], index: 2, kind: input, shape index: {}]   ;;  %s385_s3 = inlined_call_operand.hbm [shape: f32[32,96], index: 3, kind: input, shape index: {}]   ;;  %s386_s4 = inlined_call_operand.vmem [shape: f32[1,96], index: 4, kind: input, shape index: {}]   ;;  %s387_s5 = inlined_call_operand.hbm [shape: bf16[16,96], index: 5, kind: output, shape index: {}]  }
   0x1   :  { %11 = vsyncpa [#allocation6], 0 }
   0x2   :  { %12 = vsyncpa [#allocation4], 0  ;;  %s321_s18 = smov [#allocation2]  }
   0x3   :  { %s18_s19 = sshll.u32 %s321_s18, 4  ;;  %s19_s19 = int_to_ptr.vmem [resolvable:$true] %s18_s19 }
   0x4   :  { %s263_s20 = scalar_lea.vmem %s19_s19, 256  ;;  %p268_p1 = scmp.lt.s32.totalorder %s19_s19, %s19_s19 }
   0x5   :  { %p264_p0 = scmp.ne.s32.totalorder %s19_s19, %s263_s20  ;;  %p269_p2 = scmp.lt.s32.totalorder %s263_s20, %s263_s20 }
   0x7   :  { %p270_p3 = por %p269_p2, %p268_p1 }
   0x9   :  { %p271_p4 = pnand %p270_p3, %p264_p0 }
   0xb   :  { %274 = shalt.err (!%p271_p4)
}
   0xc   :  { %s322_s21 = smov 128   ;;  %s323_s22 = smov 8  }
   0xd   :  { %24 = dma.hbm_to_vmem [thread:$0]  %s382_s0, 256, %s19_s19, [#allocation3], %s322_s21, %s322_s21, %s323_s22  }
   0xe   :  { %s324_s25 = smov [#allocation5]  }
   0xf   :  { %s34_s26 = sshll.u32 %s324_s25, 4  ;;  %s35_s26 = int_to_ptr.vmem [resolvable:$true] %s34_s26 }
  0x10   :  { %s283_s27 = scalar_lea.vmem %s35_s26, 512  ;;  %p288_p6 = scmp.lt.s32.totalorder %s35_s26, %s35_s26 }
  0x11   :  { %p284_p5 = scmp.ne.s32.totalorder %s35_s26, %s283_s27  ;;  %p289_p7 = scmp.lt.s32.totalorder %s283_s27, %s283_s27 }
  0x13   :  { %p290_p8 = por %p289_p7, %p288_p6 }
  0x15   :  { %p291_p9 = pnand %p290_p8, %p284_p5 }
  0x17   :  { %294 = shalt.err (!%p291_p9)
}
  0x18   :  { %40 = dma.hbm_to_vmem [thread:$0]  %s385_s3, 512, %s35_s26, [#allocation6], %s322_s21, %s322_s21, %s323_s22  }
  0x19   :  { %315 = dma.done.wait [#allocation3], 256  }
  0x1a   :  { %316 = vsyncadd [#allocation3], 4294967040 }
  0x1b   :  { %317 = dma.done.wait [#allocation6], 512  }
  0x1c   :  { %318 = vsyncadd [#allocation6], 4294966784  ;;  %vm53_vm0 = vcmask 261120   ;;  %v49_v0 = vld [vmem:[#allocation2] sm:$0xff]  ;;  %v50_v1 = vld [vmem:[#allocation2 + $0x8] sm:$0xff]  ;;  %vm197_vm1 = vcmask 781312  }
  0x1d   :  { %v54_v2 = vsel %vm53_vm0, %v49_v0, 0.0  ;;  %v57_v3 = vsel %vm53_vm0, %v50_v1, 0.0  ;;  %v100_v14 = vld [vmem:[#allocation5 + $0x18] sm:$0xff]  ;;  %v99_v15 = vld [vmem:[#allocation5 + $0x10] sm:$0xff]  ;;  %v98_v16 = vld [vmem:[#allocation5 + $0x8] sm:$0xff] }
  0x1e   :  { %55 = vadd.xlane.f32.xlu0 %v54_v2  ;;  %233 = vmatprep.subr.mxu0 %v100_v14  ;;  %v97_v17 = vld [vmem:[#allocation5] sm:$0xff]  ;;  %v218_v25 = vld [vmem:[%s383_s1] ss:$0 sm:$0xff]  ;;  %s325_s1 = smov [#allocation7]  }
  0x1f   :  { %234 = vmatpush3.msra.mxu0 %v100_v14  ;;  %v219_v27 = vld [vmem:[%s384_s2] ss:$0 sm:$0xff]  ;;  %s205_s9 = sshll.u32 %s325_s1, 4  ;;  %s206_s9 = int_to_ptr.vmem [resolvable:$true] %s205_s9 }
  0x20   :  { %235 = vmatprep.subr.mxu0 %v99_v15  ;;  %v220_v34 = vld [vmem:[%s386_s4] ss:$0 sm:$0xff]  ;;  %s295_s2 = scalar_lea.vmem %s206_s9, 128  ;;  %p300_p11 = scmp.lt.s32.totalorder %s206_s9, %s206_s9 }
  0x21   :  { %236 = vmatpush3.msra.mxu0 %v99_v15  ;;  %p296_p10 = scmp.ne.s32.totalorder %s206_s9, %s295_s2  ;;  %p301_p12 = scmp.lt.s32.totalorder %s295_s2, %s295_s2 }
  0x22   :  { %58 = vadd.xlane.f32.xlu0 %v57_v3  ;;  %237 = vmatprep.subr.mxu0 %v98_v16 }
  0x23   :  { %238 = vmatpush3.msra.mxu0 %v98_v16  ;;  %p302_p13 = por %p301_p12, %p300_p11 }
  0x24   :  { %239 = vmatprep.subr.mxu0 %v97_v17 }
  0x25   :  { %240 = vmatpush3.msra.mxu0 %v97_v17  ;;  %p303_p0 = pnand %p302_p13, %p296_p10 }
  0xa7   :  { %v56_v4 = vpop.xlane.xlu0 %55 }
  0xa8   :  { %v61_v5 = vmul.f32 0.03125, %v56_v4 }
  0xaa   :  { %v63_v6 = vsub.f32 %v49_v0, %v61_v5 }
  0xab   :  { %v59_v7 = vpop.xlane.xlu0 %58 }
  0xac   :  { %v62_v8 = vmul.f32 0.03125, %v59_v7  ;;  %v65_v9 = vmul.f32 %v63_v6, %v63_v6 }
  0xae   :  { %v64_v10 = vsub.f32 %v50_v1, %v62_v8  ;;  %v67_v11 = vsel %vm53_vm0, %v65_v9, 0.0 }
  0xaf   :  { %68 = vadd.xlane.f32.xlu1 %v67_v11 }
  0xb0   :  { %v66_v12 = vmul.f32 %v64_v10, %v64_v10 }
  0xb2   :  { %v70_v13 = vsel %vm53_vm0, %v66_v12, 0.0 }
  0xb3   :  { %71 = vadd.xlane.f32.xlu1 %v70_v13 }
 0x138   :  { %v69_v18 = vpop.xlane.xlu1 %68 }
 0x139   :  { %v73_v19 = vmul.f32 0.03125, %v69_v18 }
 0x13b   :  { %v75_v20 = vadd.f32 1e-05, %v73_v19 }
 0x13c   :  { %v72_v21 = vpop.xlane.xlu1 %71 }
 0x13d   :  { %251 = vrsqrt.f32 %v75_v20  ;;  %v74_v22 = vmul.f32 0.03125, %v72_v21 }
 0x13f   :  { %v76_v23 = vadd.f32 1e-05, %v74_v22 }
 0x141   :  { %253 = vrsqrt.f32 %v76_v23 }
 0x14a   :  { %v252_v24 = vpop.eup %251 }
 0x14b   :  { %v79_v26 = vmul.f32 %v252_v24, %v63_v6 }
 0x14d   :  { %v87_v28 = vmul.f32 %v218_v25, %v79_v26 }
 0x14e   :  { %v254_v29 = vpop.eup %253 }
 0x14f   :  { %v80_v30 = vmul.f32 %v254_v29, %v64_v10  ;;  %v95_v31 = vadd.f32 %v219_v27, %v87_v28 }
 0x151   :  { %v88_v32 = vmul.f32 %v218_v25, %v80_v30  ;;  %241 = vmatprep.mubr.msk.f32.mxu0 %vm53_vm0, %v95_v31 }
 0x153   :  { %v96_v33 = vadd.f32 %v219_v27, %v88_v32 }
 0x155   :  { %242 = vmatmul.mubr.msk.f32.vlgmr.msra.gmra.mxu0 %vm53_vm0, %v96_v33 }
 0x215   :  { %v243_v35 = vpop.f32.mrf.mxu0 }
 0x216   :  { %v186_v36 = vadd.f32 %v243_v35, %v220_v34 }
 0x217   :  { %v180_v37 = vpop.f32.mrf.mxu0 }
 0x218   :  { %v226_v38 = vpack.c.bf16 %v186_v36, %v186_v36  ;;  %v181_v39 = vadd.f32 %v220_v34, %v180_v37 }
 0x21a   :  { %199 = vst.msk [vmem:[#allocation7 + $0x4] sm:$0xf] %vm197_vm1, %v226_v38  ;;  %v225_v40 = vpack.c.bf16 %v181_v39, %v181_v39 }
 0x21c   :  { %198 = vst.msk [vmem:[#allocation7] sm:$0xf] %vm197_vm1, %v225_v40 }
 0x21d   :  { %306 = shalt.err (!%p303_p0)
}
 0x21e   :  { %s326_s4 = smov 64   ;;  %s327_s10 = smov 4  }
 0x21f   :  { %211 = dma.vmem_to_hbm [thread:$0]  %s206_s9, 128, %s387_s5, [#allocation4], %s326_s4, %s326_s4, %s327_s10  }
 0x220   :  { %319 = dma.done.wait [#allocation4], 128  }
 0x221   :  { %320 = vsyncadd [#allocation4], 4294967168 }
 0x222   :  { %215 = vsyncpa [#allocation3], 1 }
 0x223   :  { %216 = vsyncpa [#allocation6], 1 }
 0x224   :  { %217 = vsyncpa [#allocation4], 1 }

</bundles_post_ra>
